<compile_context>
chip_gen: v5e
topology: v5e:2x2
jax: 0.10.0
libtpu: 0.0.40
codegen_flags: <defaults>
</compile_context>

<pallas_src>
import functools

import jax
import jax.numpy as jnp
from jax.experimental import pallas as pl
from jax.experimental.pallas import tpu as pltpu

LOG_STD_BOUNDS = (-5.0, 2.0)


def _round_up(x, m):
    return ((x + m - 1) // m) * m


def _cdiv(a, b):
    return (a + b - 1) // b


def _device_kind():
    try:
        return jax.devices()[0].device_kind.lower()
    except Exception:
        return ""


def _num_tensorcores_per_chip():
    # v7x has 2 TensorCores per chip; v5e/v6e have 1.
    return 2 if "v7" in _device_kind() else 1


def _resolve_matmul_dtype(matmul_dtype):
    if not (isinstance(matmul_dtype, str) and matmul_dtype == "auto"):
        return matmul_dtype
    kind = _device_kind()
    if "v6" in kind or "v7" in kind:
        return jnp.bfloat16   # full-rate bf16 MXU + halved obs DMA bytes
    return None               # v5e / older: keep f32 operands


def _actor_kernel(obs_ref, w1_ref, b1_ref, w2_ref, b2_ref, w3_ref, b3_ref,
                  out_ref, *, action_dim):
    """One batch tile of the trunk MLP.

    w3_ref/b3_ref hold [w3 | w3 | 0-pad] so a single MXU pass produces a
    lane-dense (tb, out_lanes) result; tanh is applied only to lanes in
    [action_dim, 2*action_dim), giving a packed [mu | tanh(mu) | 0] output.
    """
    x = obs_ref[...]
    h = jnp.dot(x, w1_ref[...], preferred_element_type=jnp.float32)
    h = jnp.maximum(h + b1_ref[...], 0.0)
    h = jnp.dot(h.astype(w2_ref.dtype), w2_ref[...],
                preferred_element_type=jnp.float32)
    h = jnp.maximum(h + b2_ref[...], 0.0)
    y = jnp.dot(h.astype(w3_ref.dtype), w3_ref[...],
                preferred_element_type=jnp.float32) + b3_ref[...]
    lane = jax.lax.broadcasted_iota(jnp.int32, y.shape, 1)
    tanh_lane = (lane >= action_dim) & (lane < 2 * action_dim)
    out_ref[...] = jnp.where(tanh_lane, jnp.tanh(y), y)


def diag_gaussian_actor_forward(obs, params, log_std_bounds=LOG_STD_BOUNDS,
                                block_batch=4096, matmul_dtype="auto"):
    """DiagGaussianActor.forward (bounded=True, use_nn_logstd=False).

    Returns (mu, std, squashed_mean):
      mu            : (batch, action_dim)  dist.loc
      std           : (1, action_dim)      state-independent scale (broadcasts vs mu)
      squashed_mean : (batch, action_dim)  tanh(mu) == dist.mean
    """
    w1, b1, w2, b2, w3, b3, action_logstd = params
    batch, obs_dim = obs.shape
    h1 = w1.shape[1]
    h2 = w2.shape[1]
    action_dim = w3.shape[1]

    # std depends only on the (1, action_dim) parameter -> compute once here.
    lo, hi = log_std_bounds
    log_std = lo + 0.5 * (hi - lo) * (
        jnp.tanh(action_logstd.astype(jnp.float32)) + 1.0)
    std_row = jnp.exp(log_std)                                  # (1, action_dim)

    matmul_dtype = _resolve_matmul_dtype(matmul_dtype)
    if matmul_dtype is not None:
        obs = obs.astype(matmul_dtype)
        w1 = w1.astype(matmul_dtype)
        w2 = w2.astype(matmul_dtype)
        w3 = w3.astype(matmul_dtype)

    # Final layer packed as [w3 | w3 | 0-pad]: lane-dense, 128-multiple output
    # slab -> unmasked full-lane stores, no concat relayout in the kernel.
    out_lanes = _round_up(2 * action_dim, 128)
    w3d = jnp.concatenate([w3, w3], axis=1)
    b3d = jnp.concatenate([b3, b3], axis=1).astype(jnp.float32)
    pad = out_lanes - 2 * action_dim
    if pad:
        w3d = jnp.pad(w3d, ((0, 0), (0, pad)))
        b3d = jnp.pad(b3d, ((0, 0), (0, pad)))

    # ---- batch tiling ----
    # bf16 packs 16 rows per vreg; align the row tile accordingly.
    row_align = 16 if (matmul_dtype is not None
                       and jnp.dtype(matmul_dtype).itemsize < 4) else 8
    tb_full = _round_up(batch, row_align)
    tb = _round_up(min(block_batch, tb_full), row_align)
    # v7x (2 TCs): ensure >= 2 batch tiles so "parallel" shards over both cores.
    if (_num_tensorcores_per_chip() >= 2 and tb >= tb_full
            and tb_full >= 2 * row_align):
        tb = _round_up(_cdiv(batch, 2), row_align)
    padded = _round_up(batch, tb)
    if padded != batch:
        obs = jnp.pad(obs, ((0, padded - batch), (0, 0)))
    n_tiles = padded // tb

    itemsize = jnp.dtype(obs.dtype).itemsize
    param_bytes = sum(int(a.size) * jnp.dtype(a.dtype).itemsize
                      for a in (w1, b1, w2, b2, w3d, b3d))
    flops = 2 * padded * (obs_dim * h1 + h1 * h2 + h2 * out_lanes)
    cost = pl.CostEstimate(
        flops=flops,
        transcendentals=padded * action_dim,
        bytes_accessed=(padded * obs_dim * itemsize + param_bytes
                        + padded * out_lanes * 4),
    )

    grid_spec = pltpu.PrefetchScalarGridSpec(
        num_scalar_prefetch=0,
        grid=(n_tiles,),
        in_specs=[
            pl.BlockSpec((tb, obs_dim), lambda i: (i, 0)),        # obs tile
            pl.BlockSpec((obs_dim, h1), lambda i: (0, 0)),        # VMEM-resident
            pl.BlockSpec((1, h1), lambda i: (0, 0)),
            pl.BlockSpec((h1, h2), lambda i: (0, 0)),
            pl.BlockSpec((1, h2), lambda i: (0, 0)),
            pl.BlockSpec((h2, out_lanes), lambda i: (0, 0)),
            pl.BlockSpec((1, out_lanes), lambda i: (0, 0)),
        ],
        out_specs=pl.BlockSpec((tb, out_lanes), lambda i: (i, 0)),
    )

    packed = pl.pallas_call(
        functools.partial(_actor_kernel, action_dim=action_dim),
        out_shape=jax.ShapeDtypeStruct((padded, out_lanes), jnp.float32),
        grid_spec=grid_spec,
        compiler_params=pltpu.CompilerParams(
            dimension_semantics=("parallel",),    # megacore sharding on v7x
        ),
        cost_estimate=cost,
    )(obs, w1, b1, w2, b2, w3d, b3d)

    mu = packed[:batch, :action_dim]
    squashed_mean = packed[:batch, action_dim:2 * action_dim]
    return mu, std_row, squashed_mean


def init_params(key, obs_dim, action_dim, hidden_dims):
    """Deterministic synthetic parameter init (stand-in for weight_init)."""
    keys = jax.random.split(key, 2 * (len(hidden_dims) + 1))
    dims = [obs_dim] + list(hidden_dims) + [action_dim]
    params = []
    for i in range(len(dims) - 1):
        fan_in, fan_out = dims[i], dims[i + 1]
        w = jax.random.normal(keys[2 * i], (fan_in, fan_out), jnp.float32)
        w = w * (1.0 / jnp.sqrt(jnp.float32(fan_in)))
        b = jnp.zeros((1, fan_out), jnp.float32)   # biases kept 2D for TPU layout
        params += [w, b]
    # nn.Parameter(torch.empty(1, action_dim).fill_(0.0))
    action_logstd = jnp.zeros((1, action_dim), jnp.float32)
    params.append(action_logstd)
    return tuple(params)


if __name__ == "__main__":
    obs_dim, action_dim = 32, 8
    hidden_dims = (64, 64)

    key = jax.random.PRNGKey(0)
    k_obs, k_par = jax.random.split(key)
    params = init_params(k_par, obs_dim, action_dim, hidden_dims)
    w1, b1, w2, b2, w3, b3, logstd = params

    def reference(o):
        h = jnp.maximum(o @ w1 + b1, 0.0)
        h = jnp.maximum(h @ w2 + b2, 0.0)
        mu_r = h @ w3 + b3
        ls = jnp.tanh(jnp.broadcast_to(logstd, mu_r.shape))
        lo, hi = LOG_STD_BOUNDS
        std_r = jnp.exp(lo + 0.5 * (hi - lo) * (ls + 1.0))
        return mu_r, std_r, jnp.tanh(mu_r)

    # 1) f32 operands, batch multiple of 8.
    obs8 = jax.random.normal(k_obs, (8, obs_dim), jnp.float32)
    mu, std, mean = diag_gaussian_actor_forward(obs8, params, matmul_dtype=None)
    jax.block_until_ready((mu, std, mean))
    mu_r, std_r, mean_r = reference(obs8)
    assert mu.shape == (8, action_dim) and std.shape == (1, action_dim)
    assert jnp.allclose(mu, mu_r, atol=1e-4)
    assert jnp.allclose(jnp.broadcast_to(std, mu.shape), std_r, atol=1e-4)
    assert jnp.allclose(mean, mean_r, atol=1e-4)

    # 2) f32, ragged batch (exercises the row padding / slicing / tile split).
    obs13 = jax.random.normal(jax.random.PRNGKey(1), (13, obs_dim), jnp.float32)
    mu2, std2, mean2 = diag_gaussian_actor_forward(obs13, params,
                                                   matmul_dtype=None)
    jax.block_until_ready((mu2, std2, mean2))
    mu2_r, std2_r, mean2_r = reference(obs13)
    assert mu2.shape == (13, action_dim)
    assert jnp.allclose(mu2, mu2_r, atol=1e-4)
    assert jnp.allclose(jnp.broadcast_to(std2, mu2.shape), std2_r, atol=1e-4)
    assert jnp.allclose(mean2, mean2_r, atol=1e-4)

    # 3) bf16 matmul operands (the v6e/v7x default); f32 accumulation, so only
    #    operand-cast error remains -> loose tolerance.
    mu3, std3, mean3 = diag_gaussian_actor_forward(
        obs8, params, matmul_dtype=jnp.bfloat16)
    jax.block_until_ready((mu3, std3, mean3))
    assert jnp.allclose(mu3, mu_r, atol=0.15, rtol=0.1)
    assert jnp.allclose(mean3, mean_r, atol=0.15, rtol=0.1)

    # 4) default "auto" operand-dtype path (bf16 on v6e/v7x, f32 elsewhere).
    mu4, std4, mean4 = diag_gaussian_actor_forward(obs8, params)
    jax.block_until_ready((mu4, std4, mean4))
    assert jnp.allclose(mu4, mu_r, atol=0.15, rtol=0.1)

    print("KERNEL_OK")
</pallas_src>

<mosaic_0001>
module attributes {stable_mosaic.version = 11 : i64} {
  func.func @_actor_kernel(%arg0: i32, %arg1: memref<8x32xf32, #tpu.memory_space<vmem>>, %arg2: memref<32x64xf32, #tpu.memory_space<vmem>>, %arg3: memref<1x64xf32, #tpu.memory_space<vmem>>, %arg4: memref<64x64xf32, #tpu.memory_space<vmem>>, %arg5: memref<1x64xf32, #tpu.memory_space<vmem>>, %arg6: memref<64x128xf32, #tpu.memory_space<vmem>>, %arg7: memref<1x128xf32, #tpu.memory_space<vmem>>, %arg8: memref<8x128xf32, #tpu.memory_space<vmem>>) attributes {dimension_semantics = [#tpu.dimension_semantics<parallel>], iteration_bounds = array<i64: 1>, scalar_prefetch = 0 : i64, scratch_operands = 0 : i64, tpu.core_type = #tpu.core_type<tc>, window_params = [{transform_indices = @transform_0, window_bounds = array<i64: 8, 32>}, {pipeline_mode = #tpu.pipeline_mode<synchronous>, transform_indices = @transform_1, window_bounds = array<i64: 32, 64>}, {pipeline_mode = #tpu.pipeline_mode<synchronous>, transform_indices = @transform_2, window_bounds = array<i64: 1, 64>}, {pipeline_mode = #tpu.pipeline_mode<synchronous>, transform_indices = @transform_3, window_bounds = array<i64: 64, 64>}, {pipeline_mode = #tpu.pipeline_mode<synchronous>, transform_indices = @transform_4, window_bounds = array<i64: 1, 64>}, {pipeline_mode = #tpu.pipeline_mode<synchronous>, transform_indices = @transform_5, window_bounds = array<i64: 64, 128>}, {pipeline_mode = #tpu.pipeline_mode<synchronous>, transform_indices = @transform_6, window_bounds = array<i64: 1, 128>}, {transform_indices = @transform_7, window_bounds = array<i64: 8, 128>}]} {
    %c0 = arith.constant 0 : index
    %c0_0 = arith.constant 0 : index
    %0 = vector.load %arg1[%c0, %c0_0] : memref<8x32xf32, #tpu.memory_space<vmem>>, vector<8x32xf32>
    %c0_1 = arith.constant 0 : index
    %c0_2 = arith.constant 0 : index
    %1 = vector.load %arg2[%c0_1, %c0_2] : memref<32x64xf32, #tpu.memory_space<vmem>>, vector<32x64xf32>
    %cst = arith.constant dense<0.000000e+00> : vector<8x64xf32>
    %2 = tpu.matmul %0, %1, %cst {dimension_numbers = #tpu.dot_dimension_numbers<[1], [0], [0], [1], [0, 0, 1, 1], [], []>} : vector<8x32xf32>, vector<32x64xf32>, vector<8x64xf32> -> vector<8x64xf32>
    %c0_3 = arith.constant 0 : index
    %c0_4 = arith.constant 0 : index
    %3 = vector.load %arg3[%c0_3, %c0_4] : memref<1x64xf32, #tpu.memory_space<vmem>>, vector<1x64xf32>
    %4 = vector.broadcast %3 : vector<1x64xf32> to vector<8x64xf32>
    %5 = arith.addf %2, %4 : vector<8x64xf32>
    %cst_5 = arith.constant 0.000000e+00 : f32
    %6 = vector.broadcast %cst_5 : f32 to vector<8x64xf32>
    %7 = arith.maximumf %5, %6 : vector<8x64xf32>
    %c0_6 = arith.constant 0 : index
    %c0_7 = arith.constant 0 : index
    %8 = vector.load %arg4[%c0_6, %c0_7] : memref<64x64xf32, #tpu.memory_space<vmem>>, vector<64x64xf32>
    %cst_8 = arith.constant dense<0.000000e+00> : vector<8x64xf32>
    %9 = tpu.matmul %7, %8, %cst_8 {dimension_numbers = #tpu.dot_dimension_numbers<[1], [0], [0], [1], [0, 0, 1, 1], [], []>} : vector<8x64xf32>, vector<64x64xf32>, vector<8x64xf32> -> vector<8x64xf32>
    %c0_9 = arith.constant 0 : index
    %c0_10 = arith.constant 0 : index
    %10 = vector.load %arg5[%c0_9, %c0_10] : memref<1x64xf32, #tpu.memory_space<vmem>>, vector<1x64xf32>
    %11 = vector.broadcast %10 : vector<1x64xf32> to vector<8x64xf32>
    %12 = arith.addf %9, %11 : vector<8x64xf32>
    %cst_11 = arith.constant 0.000000e+00 : f32
    %13 = vector.broadcast %cst_11 : f32 to vector<8x64xf32>
    %14 = arith.maximumf %12, %13 : vector<8x64xf32>
    %c0_12 = arith.constant 0 : index
    %c0_13 = arith.constant 0 : index
    %15 = vector.load %arg6[%c0_12, %c0_13] : memref<64x128xf32, #tpu.memory_space<vmem>>, vector<64x128xf32>
    %cst_14 = arith.constant dense<0.000000e+00> : vector<8x128xf32>
    %16 = tpu.matmul %14, %15, %cst_14 {dimension_numbers = #tpu.dot_dimension_numbers<[1], [0], [0], [1], [0, 0, 1, 1], [], []>} : vector<8x64xf32>, vector<64x128xf32>, vector<8x128xf32> -> vector<8x128xf32>
    %c0_15 = arith.constant 0 : index
    %c0_16 = arith.constant 0 : index
    %17 = vector.load %arg7[%c0_15, %c0_16] : memref<1x128xf32, #tpu.memory_space<vmem>>, vector<1x128xf32>
    %18 = vector.broadcast %17 : vector<1x128xf32> to vector<8x128xf32>
    %19 = arith.addf %16, %18 : vector<8x128xf32>
    %20 = tpu.iota {dimensions = array<i32: 1>} : vector<8x128xi32>
    %c8_i32 = arith.constant 8 : i32
    %21 = vector.broadcast %c8_i32 : i32 to vector<8x128xi32>
    %22 = arith.cmpi sge, %20, %21 : vector<8x128xi32>
    %c16_i32 = arith.constant 16 : i32
    %23 = vector.broadcast %c16_i32 : i32 to vector<8x128xi32>
    %24 = arith.cmpi slt, %20, %23 : vector<8x128xi32>
    %25 = arith.andi %22, %24 : vector<8x128xi1>
    %26 = math.tanh %19 : vector<8x128xf32>
    %27 = arith.select %25, %26, %19 : vector<8x128xi1>, vector<8x128xf32>
    %c0_17 = arith.constant 0 : index
    %c0_18 = arith.constant 0 : index
    %28 = vector.load %arg8[%c0_17, %c0_18] : memref<8x128xf32, #tpu.memory_space<vmem>>, vector<8x128xf32>
    tpu.vector_store %arg8[%c0_17, %c0_18], %27 {strides = array<i32>} : memref<8x128xf32, #tpu.memory_space<vmem>>, vector<8x128xf32>,
    return
  }
  func.func @transform_0(%arg0: i32) -> (i32, i32) {
    %c0_i32 = arith.constant 0 : i32
    %c0_i32_0 = arith.constant 0 : i32
    return %arg0, %c0_i32 : i32, i32
  }
  func.func @transform_1(%arg0: i32) -> (i32, i32) {
    %c0_i32 = arith.constant 0 : i32
    %c0_i32_0 = arith.constant 0 : i32
    %c0_i32_1 = arith.constant 0 : i32
    return %c0_i32, %c0_i32_0 : i32, i32
  }
  func.func @transform_2(%arg0: i32) -> (i32, i32) {
    %c0_i32 = arith.constant 0 : i32
    %c0_i32_0 = arith.constant 0 : i32
    %c0_i32_1 = arith.constant 0 : i32
    return %c0_i32, %c0_i32_0 : i32, i32
  }
  func.func @transform_3(%arg0: i32) -> (i32, i32) {
    %c0_i32 = arith.constant 0 : i32
    %c0_i32_0 = arith.constant 0 : i32
    %c0_i32_1 = arith.constant 0 : i32
    return %c0_i32, %c0_i32_0 : i32, i32
  }
  func.func @transform_4(%arg0: i32) -> (i32, i32) {
    %c0_i32 = arith.constant 0 : i32
    %c0_i32_0 = arith.constant 0 : i32
    %c0_i32_1 = arith.constant 0 : i32
    return %c0_i32, %c0_i32_0 : i32, i32
  }
  func.func @transform_5(%arg0: i32) -> (i32, i32) {
    %c0_i32 = arith.constant 0 : i32
    %c0_i32_0 = arith.constant 0 : i32
    %c0_i32_1 = arith.constant 0 : i32
    return %c0_i32, %c0_i32_0 : i32, i32
  }
  func.func @transform_6(%arg0: i32) -> (i32, i32) {
    %c0_i32 = arith.constant 0 : i32
    %c0_i32_0 = arith.constant 0 : i32
    %c0_i32_1 = arith.constant 0 : i32
    return %c0_i32, %c0_i32_0 : i32, i32
  }
  func.func @transform_7(%arg0: i32) -> (i32, i32) {
    %c0_i32 = arith.constant 0 : i32
    %c0_i32_0 = arith.constant 0 : i32
    return %arg0, %c0_i32 : i32, i32
  }
}

</mosaic_0001>

<bundles_post_ra>
// kernel: tpu_custom_call.1
= control target key start
LH: loop header
LB: loop body
LE: loop exit
PB: predicated region body
PF: predicated region fallthrough
CT: control target
= control target key end

     0   :  { %12 = vsyncpa [#allocation3], 0  ;;  %s435_s0 = inlined_call_operand.hbm [shape: f32[8,32], index: 0, kind: input, shape index: {}]   ;;  %s436_s1 = inlined_call_operand.hbm [shape: f32[32,64], index: 1, kind: input, shape index: {}]   ;;  %s437_s2 = inlined_call_operand.vmem [shape: f32[1,64], index: 2, kind: input, shape index: {}]   ;;  %s438_s3 = inlined_call_operand.hbm [shape: f32[64,64], index: 3, kind: input, shape index: {}]   ;;  %s439_s4 = inlined_call_operand.vmem [shape: f32[1,64], index: 4, kind: input, shape index: {}]   ;;  %s440_s5 = inlined_call_operand.hbm [shape: f32[64,128], index: 5, kind: input, shape index: {}]   ;;  %s441_s6 = inlined_call_operand.vmem [shape: f32[1,128], index: 6, kind: input, shape index: {}]   ;;  %s442_s7 = inlined_call_operand.hbm [shape: f32[8,128], index: 7, kind: output, shape index: {}]  }
   0x1   :  { %13 = vsyncpa [#allocation6], 0 }
   0x2   :  { %14 = vsyncpa [#allocation9], 0  ;;  %s31_s26 = sshll.u32 %s436_s1, 4  ;;  %s32_s26 = int_to_ptr.hbm [resolvable:$true] %s31_s26 }
   0x3   :  { %15 = vsyncpa [#allocation4], 0  ;;  %s364_s27 = smov [#allocation5]   ;;  %s21_s8 = sshll.u32 %s435_s0, 4  ;;  %s22_s8 = int_to_ptr.hbm [resolvable:$true] %s21_s8 }
   0x4   :  { %s33_s28 = sshll.u32 %s364_s27, 4  ;;  %s365_s9 = smov 128   ;;  %s34_s28 = int_to_ptr.vmem [resolvable:$true] %s33_s28 }
   0x5   :  { %s366_s10 = smov 8   ;;  %s367_s11 = smov [#allocation2]  }
   0x6   :  { %39 = dma.hbm_to_vmem [thread:$0]  %s32_s26, 512, %s34_s28, [#allocation6], %s365_s9, %s365_s9, %s366_s10  }
   0x7   :  { %s23_s12 = sshll.u32 %s367_s11, 4  ;;  %s46_s15 = sshll.u32 %s438_s3, 4  ;;  %s24_s12 = int_to_ptr.vmem [resolvable:$true] %s23_s12  ;;  %s47_s15 = int_to_ptr.hbm [resolvable:$true] %s46_s15 }
   0x8   :  { %26 = dma.hbm_to_vmem [thread:$0]  %s22_s8, 128, %s24_s12, [#allocation3]  }
   0x9   :  { %s61_s17 = sshll.u32 %s440_s5, 4  ;;  %s368_s18 = smov [#allocation7]   ;;  %s62_s17 = int_to_ptr.hbm [resolvable:$true] %s61_s17 }
   0xa   :  { %s48_s19 = sshll.u32 %s368_s18, 4  ;;  %s369_s0 = smov [#allocation8]   ;;  %s49_s19 = int_to_ptr.vmem [resolvable:$true] %s48_s19 }
   0xb   :  { %54 = dma.hbm_to_vmem [thread:$0]  %s47_s15, 1024, %s49_s19, [#allocation6], %s365_s9, %s365_s9, %s366_s10  }
   0xc   :  { %s63_s20 = sshll.u32 %s369_s0, 4  ;;  %s64_s20 = int_to_ptr.vmem [resolvable:$true] %s63_s20 }
   0xd   :  { %69 = dma.hbm_to_vmem [thread:$0]  %s62_s17, 1024, %s64_s20, [#allocation9], %s365_s9, %s365_s9, %s366_s10  }
   0xe   :  { %356 = dma.done.wait [#allocation3], 128  }
   0xf   :  { %357 = vsyncadd [#allocation3], 4294967168 }
  0x10   :  { %358 = dma.done.wait [#allocation6], 1536  }
  0x11   :  { %359 = vsyncadd [#allocation6], 4294965760 }
  0x12   :  { %360 = dma.done.wait [#allocation9], 1024  }
  0x13   :  { %361 = vsyncadd [#allocation9], 4294966272  ;;  %v92_v0 = vld [vmem:[#allocation5 + $0x18] sm:$0xff]  ;;  %v91_v1 = vld [vmem:[#allocation5 + $0x10] sm:$0xff]  ;;  %vm97_vm0 = vcmask 261120   ;;  %vm134_vm1 = vcmask 523264   ;;  %v194_v29 = vlaneseq }
  0x14   :  { %113 = vmatpush.msra.mxu0 %v92_v0  ;;  %v129_v2 = vld [vmem:[#allocation7 + $0x38] sm:$0xff]  ;;  %v90_v3 = vld [vmem:[#allocation5 + $0x8] sm:$0xff]  ;;  %v128_v4 = vld [vmem:[#allocation7 + $0x30] sm:$0xff]  ;;  %s370_s24 = smov [#allocation10]  }
  0x15   :  { %146 = vmatpush.msra.mxu1 %v129_v2  ;;  %v127_v5 = vld [vmem:[#allocation7 + $0x28] sm:$0xff]  ;;  %v89_v6 = vld [vmem:[#allocation5] sm:$0xff]  ;;  %v88_v7 = vld [vmem:[#allocation2] sm:$0xff]  ;;  %v195_v32 = vand.u32 127, %v194_v29  ;;  %s207_s25 = sshll.u32 %s370_s24, 4  ;;  %s208_s25 = int_to_ptr.vmem [resolvable:$true] %s207_s25 }
  0x16   :  { %114 = vmatpush.msra.mxu0 %v91_v1  ;;  %v126_v8 = vld [vmem:[#allocation7 + $0x20] sm:$0xff]  ;;  %v125_v9 = vld [vmem:[#allocation7 + $0x18] sm:$0xff]  ;;  %v124_v10 = vld [vmem:[#allocation7 + $0x10] sm:$0xff] }
  0x17   :  { %147 = vmatpush.msra.mxu1 %v128_v4  ;;  %v123_v11 = vld [vmem:[#allocation7 + $0x8] sm:$0xff]  ;;  %v122_v12 = vld [vmem:[#allocation7] sm:$0xff]  ;;  %v166_v13 = vld [vmem:[#allocation8 + $0x38] sm:$0xff]  ;;  %vm196_vm2 = vcmp.ge.s32.totalorder %v195_v32, 8  ;;  %vm197_vm3 = vcmp.lt.s32.totalorder %v195_v32, 16 }
  0x18   :  { %115 = vmatpush.msra.mxu0 %v90_v3  ;;  %v165_v14 = vld [vmem:[#allocation8 + $0x30] sm:$0xff]  ;;  %182 = vmatpush.msra.mxu2 %v166_v13  ;;  %v164_v15 = vld [vmem:[#allocation8 + $0x28] sm:$0xff]  ;;  %v163_v16 = vld [vmem:[#allocation8 + $0x20] sm:$0xff] }
  0x19   :  { %148 = vmatpush.msra.mxu1 %v127_v5  ;;  %v162_v17 = vld [vmem:[#allocation8 + $0x18] sm:$0xff]  ;;  %v161_v22 = vld [vmem:[#allocation8 + $0x10] sm:$0xff]  ;;  %v160_v23 = vld [vmem:[#allocation8 + $0x8] sm:$0xff] }
  0x1a   :  { %116 = vmatpush.msra.mxu0 %v89_v6  ;;  %183 = vmatpush.msra.mxu2 %v165_v14  ;;  %v231_v18 = vld [vmem:[%s437_s2] ss:$0 sm:$0xff]  ;;  %v159_v24 = vld [vmem:[#allocation8] sm:$0xff]  ;;  %vm198_vm4 = vmand %vm196_vm2, %vm197_vm3 }
  0x1b   :  { %221 = vmatmul.msk.f32.vlgmr.msra.gmra.mxu0 %vm97_vm0, %v88_v7  ;;  %149 = vmatpush.msra.mxu1 %v126_v8  ;;  %v232_v25 = vld [vmem:[%s439_s4] ss:$0 sm:$0xff]  ;;  %s209_s4 = sshll.u32 %s442_s7, 4  ;;  %s210_s4 = int_to_ptr.hbm [resolvable:$true] %s209_s4 }
  0x1c   :  { %184 = vmatpush.msra.mxu2 %v164_v15  ;;  %v233_v30 = vld [vmem:[%s441_s6] ss:$0 sm:$0xff] }
  0x1d   :  { %150 = vmatpush.msra.mxu1 %v125_v9 }
  0x1e   :  { %185 = vmatpush.msra.mxu2 %v163_v16 }
  0x1f   :  { %151 = vmatpush.msra.mxu1 %v124_v10 }
  0x20   :  { %186 = vmatpush.msra.mxu2 %v162_v17 }
  0x21   :  { %152 = vmatpush.msra.mxu1 %v123_v11 }
  0x22   :  { %187 = vmatpush.msra.mxu2 %v161_v22 }
  0x23   :  { %153 = vmatpush.msra.mxu1 %v122_v12 }
  0x24   :  { %188 = vmatpush.msra.mxu2 %v160_v23 }
  0x26   :  { %189 = vmatpush.msra.mxu2 %v159_v24 }
  0x98   :  { %v118_v19 = vpop.f32.mrf.mxu0 }
  0x99   :  { %v119_v20 = vadd.f32 %v231_v18, %v118_v19 }
  0x9b   :  { %v121_v21 = vmax.f32 %v119_v20, 0.0 }
  0x9d   :  { %222 = vmatmul.msk.f32.vlgmr.msra.gmra.mxu1 %vm134_vm1, %v121_v21 }
 0x11a   :  { %v155_v26 = vpop.f32.mrf.mxu1 }
 0x11b   :  { %v156_v27 = vadd.f32 %v232_v25, %v155_v26 }
 0x11d   :  { %v158_v28 = vmax.f32 %v156_v27, 0.0 }
 0x11f   :  { %223 = vmatmul.msk.f32.vlgmr.msra.gmra.mxu2 %vm134_vm1, %v158_v28 }
 0x1a2   :  { %v191_v31 = vpop.f32.mrf.mxu2 }
 0x1a3   :  { %v192_v33 = vadd.f32 %v233_v30, %v191_v31 }
 0x1a5   :  { %234 = vtanh.f32 %v192_v33 }
 0x1ab   :  { %v235_v34 = vpop.eup %234 }
 0x1ac   :  { %v200_v35 = vsel %vm198_vm4, %v235_v34, %v192_v33 }
 0x1ad   :  { %201 = vst [vmem:[#allocation10] sm:$0xff] %v200_v35 }
 0x1ae   :  { %212 = dma.vmem_to_hbm [thread:$0]  %s208_s25, 128, %s210_s4, [#allocation4]  }
 0x1af   :  { %362 = dma.done.wait [#allocation4], 128  }
 0x1b0   :  { %363 = vsyncadd [#allocation4], 4294967168 }
 0x1b1   :  { %217 = vsyncpa [#allocation3], 1 }
 0x1b2   :  { %218 = vsyncpa [#allocation6], 1 }
 0x1b3   :  { %219 = vsyncpa [#allocation9], 1 }
 0x1b4   :  { %220 = vsyncpa [#allocation4], 1 }

</bundles_post_ra>
